<compile_context>
chip_gen: v7x
topology: tpu7x:2x2x1
jax: 0.10.0
libtpu: 0.0.40
codegen_flags: <defaults>
</compile_context>

<pallas_src>
import math

import jax
import jax.numpy as jnp
from jax import lax
from jax.experimental import pallas as pl
from jax.experimental.pallas import tpu as pltpu


def _choose_block_batch(batch, seq_len, d_model, out_itemsize, target_bytes=4 << 20):
    """Largest divisor of `batch` whose OUTPUT block fits `target_bytes`, preferring
    choices that keep >= 2 grid steps (feeds both v7x TensorCores under
    dimension_semantics=('parallel',); harmless on single-TC v5e/v6e).  ~4 MiB
    output blocks double-buffer comfortably within every gen's VMEM (incl. v7x's
    64 MiB) while amortizing the ~0.35us/step grid overhead."""
    row_bytes = seq_len * d_model * out_itemsize
    divs = [t for t in range(1, batch + 1)
            if batch % t == 0 and t * row_bytes <= target_bytes]
    if not divs:
        return 1
    multi = [t for t in divs if batch // t >= 2]
    return max(multi) if multi else max(divs)


def data_embedding_wo_pos(x, x_mark, conv_weight, temp_table, *,
                          compute_dtype=jnp.float32, out_dtype=jnp.float32,
                          block_batch=None):
    """Fused DataEmbedding_wo_pos forward.

    x:           [B, L, c_in]    float
    x_mark:      [B, L, n_marks] int (temperature bucket is column 1)
    conv_weight: [d_model, c_in, 3]  (PyTorch Conv1d weight layout)
    temp_table:  [60, d_model]   fixed (or learned) temporal embedding table
    returns:     [B, L, d_model] out_dtype (f32 accumulation, cast only at store)
    """
    B, L, C = x.shape
    D, C_w, K = conv_weight.shape
    V = temp_table.shape[0]
    assert C == C_w and K == 3 and temp_table.shape == (V, D)
    KK = 3 * C + V

    # Parameter-layout prep (tiny, (3C+V, D); in a real model done once at init).
    # Row order matches the in-kernel LHS concat [x_{t-1} | x_t | x_{t+1} | onehot].
    rhs = jnp.concatenate(
        [conv_weight[:, :, 0].T,       # tap applied to x[t-1]
         conv_weight[:, :, 1].T,       # tap applied to x[t]
         conv_weight[:, :, 2].T,       # tap applied to x[t+1]
         temp_table],
        axis=0).astype(compute_dtype)

    # Temperature bucket column (module: x_mark.long()[:, :, 1:2]).
    # Contract: indices must lie in [0, V).  Out-of-range indices yield an all-zero
    # one-hot row (zero embedding) instead of erroring like PyTorch nn.Embedding.
    t_idx = x_mark[:, :, 1:2].astype(jnp.int32)

    out_itemsize = jnp.dtype(out_dtype).itemsize
    TB = block_batch if block_batch is not None else _choose_block_batch(
        B, L, D, out_itemsize)
    assert B % TB == 0

    def kernel(x_ref, t_ref, w_ref, o_ref):
        # x_ref: (TB, L, C)   t_ref: (TB, L, 1) int32
        # w_ref: (3C+V, D)    o_ref: (TB, L, D)
        xb = x_ref[...]
        # Circular taps built in-kernel on the XLU (sublane rotate, axis=1).
        # pltpu.roll follows jnp.roll semantics: result[t] = x[(t - shift) % L].
        # Exact because the whole sequence L is resident in this block.
        # NOTE: if L is ever tiled, explicit halo handling is required here.
        xp = pltpu.roll(xb, shift=1, axis=1)        # x[(t-1) % L]
        xn = pltpu.roll(xb, shift=L - 1, axis=1)    # x[(t+1) % L]
        # One-hot temporal lookup, built once for the whole block (no per-b rebuild).
        onehot = (lax.broadcasted_iota(jnp.int32, (TB, L, V), 2) == t_ref[...])
        lhs = jnp.concatenate([xp, xb, xn, onehot.astype(xb.dtype)], axis=-1)
        # Exactly one cast pass over the LHS (no-op when compute_dtype == x.dtype).
        # L multiple of 8 keeps the (TB,L,*) <-> (TB*L,*) reshapes copy-free.
        lhs = lhs.reshape(TB * L, KK).astype(compute_dtype)
        # Single MXU matmul per block; f32 accumulation, cast only at the store.
        y = jnp.dot(lhs, w_ref[...], preferred_element_type=jnp.float32)
        o_ref[...] = y.reshape(TB, L, D).astype(o_ref.dtype)
        # TODO(synk): nn.Dropout(p=0.1) is identity in eval mode; a training-mode
        # kernel would draw the mask with pltpu.prng_seed / pltpu.prng_random_bits.

    return pl.pallas_call(
        kernel,
        out_shape=jax.ShapeDtypeStruct((B, L, D), out_dtype),
        grid=(B // TB,),
        in_specs=[
            pl.BlockSpec((TB, L, C), lambda g: (g, 0, 0)),   # x (native dtype)
            pl.BlockSpec((TB, L, 1), lambda g: (g, 0, 0)),   # temperature indices
            pl.BlockSpec((KK, D), lambda g: (0, 0)),         # fused [conv taps; table]
        ],
        out_specs=pl.BlockSpec((TB, L, D), lambda g: (g, 0, 0)),
        compiler_params=pltpu.CompilerParams(
            dimension_semantics=("parallel",),
            vmem_limit_bytes=32 * 1024 * 1024),
    )(x, t_idx, rhs)


def init_conv_weight(key, c_in, d_model, kernel_size=3):
    """kaiming_normal_(mode='fan_in', nonlinearity='leaky_relu') equivalent."""
    fan_in = c_in * kernel_size
    gain = math.sqrt(2.0 / (1.0 + 0.01 ** 2))  # PyTorch leaky_relu gain, slope=0.01
    std = gain / math.sqrt(fan_in)
    return jax.random.normal(key, (d_model, c_in, kernel_size), jnp.float32) * std


def fixed_embedding_table(c_in, d_model):
    """FixedEmbedding weight: interleaved sin/cos sinusoidal table [c_in, d_model]."""
    position = jnp.arange(c_in, dtype=jnp.float32)[:, None]
    div_term = jnp.exp(jnp.arange(0, d_model, 2, dtype=jnp.float32)
                       * -(math.log(10000.0) / d_model))
    ang = position * div_term
    tbl = jnp.zeros((c_in, d_model), jnp.float32)
    tbl = tbl.at[:, 0::2].set(jnp.sin(ang))
    tbl = tbl.at[:, 1::2].set(jnp.cos(ang))
    return tbl


def reference_forward(x, x_mark, conv_weight, temp_table):
    """Pure-JAX reference of the fused forward (high-precision matmuls)."""
    hi = lax.Precision.HIGHEST
    w0 = conv_weight[:, :, 0].T
    w1 = conv_weight[:, :, 1].T
    w2 = conv_weight[:, :, 2].T
    x_prev = jnp.roll(x, 1, axis=1)
    x_next = jnp.roll(x, -1, axis=1)
    val = (jnp.einsum("blc,cd->bld", x_prev, w0, precision=hi)
           + jnp.einsum("blc,cd->bld", x, w1, precision=hi)
           + jnp.einsum("blc,cd->bld", x_next, w2, precision=hi))
    temb = temp_table[x_mark[:, :, 1].astype(jnp.int32)]
    return val + temb


if __name__ == "__main__":
    # d_model = 128 keeps the output block lane-dense (multiple of 128).
    B, L, c_in, d_model = 2, 8, 4, 128
    n_marks, temperature_size = 4, 60

    key = jax.random.PRNGKey(0)
    kx, kw, km = jax.random.split(key, 3)
    x = jax.random.normal(kx, (B, L, c_in), jnp.float32)
    x_mark = jax.random.randint(km, (B, L, n_marks), 0, temperature_size,
                                dtype=jnp.int32)
    conv_w = init_conv_weight(kw, c_in, d_model, kernel_size=3)
    table = fixed_embedding_table(temperature_size, d_model)

    ref = reference_forward(x, x_mark, conv_w, table)

    # f32 path (tight check; v6e/v7x f32 matmuls are multi-pass bf16, hence the slack).
    out = jax.block_until_ready(data_embedding_wo_pos(x, x_mark, conv_w, table))
    assert out.shape == (B, L, d_model) and out.dtype == jnp.float32
    assert jnp.allclose(out, ref, rtol=5e-4, atol=5e-4), "f32 kernel mismatch vs reference"

    # bf16 compute + bf16 output path: halves the dominant HBM write, f32 accumulation.
    out_bf16 = jax.block_until_ready(
        data_embedding_wo_pos(x, x_mark, conv_w, table,
                              compute_dtype=jnp.bfloat16, out_dtype=jnp.bfloat16))
    assert out_bf16.shape == (B, L, d_model) and out_bf16.dtype == jnp.bfloat16
    assert float(jnp.max(jnp.abs(out_bf16.astype(jnp.float32) - ref))) < 0.2, \
        "bf16 kernel drifted too far"

    print("KERNEL_OK")
</pallas_src>

<mosaic_0001>
module attributes {stable_mosaic.version = 11 : i64} {
  func.func @kernel(%arg0: i32, %arg1: memref<1x8x4xf32, #tpu.memory_space<vmem>>, %arg2: memref<1x8x1xi32, #tpu.memory_space<vmem>>, %arg3: memref<72x128xf32, #tpu.memory_space<vmem>>, %arg4: memref<1x8x128xf32, #tpu.memory_space<vmem>>) attributes {dimension_semantics = [#tpu.dimension_semantics<parallel>], iteration_bounds = array<i64: 2>, scalar_prefetch = 0 : i64, scratch_operands = 0 : i64, tpu.core_type = #tpu.core_type<tc>, window_params = [{transform_indices = @transform_0, window_bounds = array<i64: 1, 8, 4>}, {transform_indices = @transform_1, window_bounds = array<i64: 1, 8, 1>}, {pipeline_mode = #tpu.pipeline_mode<synchronous>, transform_indices = @transform_2, window_bounds = array<i64: 72, 128>}, {transform_indices = @transform_3, window_bounds = array<i64: 1, 8, 128>}]} {
    %c0 = arith.constant 0 : index
    %c0_0 = arith.constant 0 : index
    %c0_1 = arith.constant 0 : index
    %0 = vector.load %arg1[%c0, %c0_0, %c0_1] : memref<1x8x4xf32, #tpu.memory_space<vmem>>, vector<1x8x4xf32>
    %c1_i32 = arith.constant 1 : i32
    %1 = tpu.dynamic_rotate %0 by %c1_i32 dim 1 : vector<1x8x4xf32>, i32 -> vector<1x8x4xf32>
    %c7_i32 = arith.constant 7 : i32
    %2 = tpu.dynamic_rotate %0 by %c7_i32 dim 1 : vector<1x8x4xf32>, i32 -> vector<1x8x4xf32>
    %3 = tpu.iota {dimensions = array<i32: 2>} : vector<1x8x60xi32>
    %c0_2 = arith.constant 0 : index
    %c0_3 = arith.constant 0 : index
    %c0_4 = arith.constant 0 : index
    %4 = vector.load %arg2[%c0_2, %c0_3, %c0_4] : memref<1x8x1xi32, #tpu.memory_space<vmem>>, vector<1x8x1xi32>
    %5 = vector.broadcast %4 : vector<1x8x1xi32> to vector<1x8x60xi32>
    %6 = arith.cmpi eq, %3, %5 : vector<1x8x60xi32>
    %7 = arith.extui %6 : vector<1x8x60xi1> to vector<1x8x60xi32>
    %8 = arith.sitofp %7 : vector<1x8x60xi32> to vector<1x8x60xf32>
    %9 = tpu.concatenate %1, %0, %2, %8 in 2 : vector<1x8x4xf32>, vector<1x8x4xf32>, vector<1x8x4xf32>, vector<1x8x60xf32> -> vector<1x8x72xf32>
    %10 = vector.shape_cast %9 : vector<1x8x72xf32> to vector<8x72xf32>
    %c0_5 = arith.constant 0 : index
    %c0_6 = arith.constant 0 : index
    %11 = vector.load %arg3[%c0_5, %c0_6] : memref<72x128xf32, #tpu.memory_space<vmem>>, vector<72x128xf32>
    %cst = arith.constant dense<0.000000e+00> : vector<8x128xf32>
    %12 = tpu.matmul %10, %11, %cst {dimension_numbers = #tpu.dot_dimension_numbers<[1], [0], [0], [1], [0, 0, 1, 1], [], []>} : vector<8x72xf32>, vector<72x128xf32>, vector<8x128xf32> -> vector<8x128xf32>
    %13 = vector.shape_cast %12 : vector<8x128xf32> to vector<1x8x128xf32>
    %c0_7 = arith.constant 0 : index
    %c0_8 = arith.constant 0 : index
    %c0_9 = arith.constant 0 : index
    %14 = vector.load %arg4[%c0_7, %c0_8, %c0_9] : memref<1x8x128xf32, #tpu.memory_space<vmem>>, vector<1x8x128xf32>
    tpu.vector_store %arg4[%c0_7, %c0_8, %c0_9], %13 {strides = array<i32>} : memref<1x8x128xf32, #tpu.memory_space<vmem>>, vector<1x8x128xf32>,
    return
  }
  func.func @transform_0(%arg0: i32) -> (i32, i32, i32) {
    %c0_i32 = arith.constant 0 : i32
    %c0_i32_0 = arith.constant 0 : i32
    %c0_i32_1 = arith.constant 0 : i32
    return %arg0, %c0_i32, %c0_i32_0 : i32, i32, i32
  }
  func.func @transform_1(%arg0: i32) -> (i32, i32, i32) {
    %c0_i32 = arith.constant 0 : i32
    %c0_i32_0 = arith.constant 0 : i32
    %c0_i32_1 = arith.constant 0 : i32
    return %arg0, %c0_i32, %c0_i32_0 : i32, i32, i32
  }
  func.func @transform_2(%arg0: i32) -> (i32, i32) {
    %c0_i32 = arith.constant 0 : i32
    %c0_i32_0 = arith.constant 0 : i32
    %c0_i32_1 = arith.constant 0 : i32
    return %c0_i32, %c0_i32_0 : i32, i32
  }
  func.func @transform_3(%arg0: i32) -> (i32, i32, i32) {
    %c0_i32 = arith.constant 0 : i32
    %c0_i32_0 = arith.constant 0 : i32
    %c0_i32_1 = arith.constant 0 : i32
    return %arg0, %c0_i32, %c0_i32_0 : i32, i32, i32
  }
}

</mosaic_0001>

<bundles_post_ra>
// kernel: tpu_custom_call.1
= control target key start
LH: loop header
LB: loop body
LE: loop exit
PB: predicated region body
PF: predicated region fallthrough
CT: control target
= control target key end

     0   :  { %8 = vsyncpa [#allocation3], 0  ;;  %s792_s0 = inlined_call_operand.vmem [shape: f32[2,8,4], index: 0, kind: input, shape index: {}]   ;;  %s793_s1 = inlined_call_operand.vmem [shape: s32[2,8,1], index: 1, kind: input, shape index: {}]   ;;  %s794_s2 = inlined_call_operand.hbm [shape: f32[72,128], index: 2, kind: input, shape index: {}]   ;;  %s795_s3 = inlined_call_operand.hbm [shape: f32[2,8,128], index: 3, kind: output, shape index: {}]  }
   0x1   :  { %9 = vsyncpa [#allocation4], 0 }
   0x2   :  { %11 = vsyncpa [#allocation4 + $0x1], 0  ;;  %s654_s12 = smov 0   ;;  %s656_s13 = smov 0  }
   0x3   :  { %s658_s14 = smov 0   ;;  %s660_s15 = smov 0  }
   0x4 LB: > { %s675_s16 = sadd.s32 4294967295, %s621_s15   ;;  %s409_s17 = sadd.s32 4294967294, %s621_s15   ;;  %s621_s15 = sphi %s660_s15, %s811_s15   ;;  %s617_s14 = sphi %s658_s14, %s810_s14   ;;  %s613_s13 = sphi %s656_s13, %s809_s13   ;;  %s609_s12 = sphi %s654_s12, %s808_s12  }
   0x5   : > { %s679_s18 = sadd.s32 1, %s621_s15   ;;  %s97_s19 = sadd.s32 1, %s617_s14 }
   0x6   : > { %s94_s20 = ssub.s32 %s621_s15, %s679_s18  ;;  %p107_p0 = scmp.ne.s32.totalorder %s617_s14, %s613_s13 }
   0x7   : > { %p95_p1 = scmp.eq.s32.totalorder %s94_s20, 0  ;;  %p108_p2 = scmp.eq.s32.totalorder %s675_s16, 1 }
   0x8   : > { %p113_p3 = scmp.ne.s32.totalorder %s613_s13, %s609_s12  ;;  %p114_p4 = scmp.eq.s32.totalorder %s409_s17, 1 }
   0x9   : > { %s690_s21 = scalar_select %p95_p1, %s617_s14, %s97_s19  }
   0xa   : > { %p692_p5 = por %p108_p2, %p107_p0  ;;  %p696_p6 = por %p114_p4, %p113_p3 }
   0xb   : > { %p410_p7 = scmp.ge.s32.totalorder %s621_s15, 1  ;;  %p121_p8 = scmp.lt.s32.totalorder %s621_s15, 3 }
   0xc   : > { %s799_s22 = scalar_select %p692_p5, 1, 0 }
   0xd   : > { %s800_s23 = scalar_select %p696_p6, 1, 0 }
   0xe   : > { %p796_p9 = scmp.eq.s32.totalorder %s675_s16, 0  ;;  %p703_p10 = pnand %p410_p7, %p121_p8 }
   0xf   : > { %s623_s25 = smov [#allocation2]   ;;  %s527_s30 = scalar_lea.hbm %s794_s2, 1152 }
  0x10   : > { %s801_s24 = scalar_select %p703_p10, 1, 0 }
  0x11   : > { %s133_s26 = sshll.u32 %s623_s25, 4  ;;  %p473_p11 = pneg %p703_p10  ;;  %s134_s26 = int_to_ptr.vmem [resolvable:$true] %s133_s26 }
  0x12   : > { %p528_p13 = scmp.ne.s32.totalorder %s794_s2, %s527_s30  ;;  %p534_p3 = scmp.lt.u32.totalorder %s527_s30, %s794_s2 }
  0x13   : > { %p711_p12 = pnand %p796_p9, %p473_p11 }
  0x15   : > { %p529_p0 = pneg %p711_p12 }
  0x17   : > { %p530_p1 = pnand %p529_p0, %p528_p13 }
  0x19   : > { %p531_p2 = pneg %p530_p1 }
  0x1b   : > { %p536_p4 = pnand %p534_p3, %p531_p2 }
  0x1d   : > { %539 = shalt.err (!%p536_p4)
}
  0x1e   : > { %s540_s8 = scalar_lea.vmem %s134_s26, 1152  ;;  %p548_p9 = scmp.lt.s32.totalorder %s134_s26, %s134_s26 }
  0x1f   : > { %p541_p7 = scmp.ne.s32.totalorder %s134_s26, %s540_s8  ;;  %p549_p6 = scmp.lt.s32.totalorder %s540_s8, %s540_s8 }
  0x21   : > { %p543_p8 = pnand %p541_p7, %p529_p0  ;;  %p550_p5 = por %p549_p6, %p548_p9 }
  0x23   : > { %p544_p11 = pneg %p543_p8 }
  0x25   : > { %p551_p10 = pnand %p550_p5, %p544_p11 }
  0x27   : > { %554 = shalt.err (!%p551_p10)
}
  0x28   : > { %s624_s9 = smov 128   ;;  %s625_s10 = smov 8  }
  0x29   : > { %476 = dma.hbm_to_vmem [thread:$0]  (!%p711_p12), %s794_s2, 1152, %s134_s26, [#allocation3], %s624_s9, %s624_s9, %s625_s10  }
  0x2a   : > { %p803_p13 = scmp.ne.s32.totalorder %s801_s24, 0 }
  0x2b   : > { %p804_p1 = scmp.eq.s32.totalorder (!%p803_p13), %s675_s16, 0 }
  0x2c   : > { %163 = sbr.rel (%p803_p13) target bundleno = 531 (0x213), region = 32 }
  0x33   : > { %600 = dma.done.wait (%p804_p1), [#allocation3], 1152   ;;  %p805_p0 = pmov %p804_p1 }
  0x34   : > { %p190_p5 = scmp.lt.s32.totalorder %s675_s16, 1  ;;  %v626_v0 = vmov 0   ;;  %s627_s30 = smov 8   ;;  %v228_v4 = vld [vmem:[#allocation2] sm:$0xff]  ;;  %v229_v5 = vld [vmem:[#allocation2 + $0x8] sm:$0xff]  ;;  %v230_v6 = vld [vmem:[#allocation2 + $0x10] sm:$0xff]  ;;  %v201_v19 = vlaneseq }
  0x35   : > { %602 = vsyncadd (%p805_p0), [#allocation3], 4294966144  ;;  %526 = vset.pattern.permute.xlu0 %v626_v0  ;;  %v628_v7 = vmov 0.0|0.0   ;;  %v456_v8 = vpack.c.bf16 %v229_v5, %v228_v4  ;;  %v231_v9 = vld [vmem:[#allocation2 + $0x18] sm:$0xff]  ;;  %s629_s4 = smov 4   ;;  %v232_v11 = vld [vmem:[#allocation2 + $0x20] sm:$0xff] }
  0x36   : > { %s191_s19 = scalar_select %p190_p5, %s675_s16, 1  ;;  %455 = vmatprep.subr.bf16.mxu0 %v628_v7  ;;  %v459_v10 = vpack.c.bf16 %v231_v9, %v230_v6  ;;  %v233_v12 = vld [vmem:[#allocation2 + $0x28] sm:$0xff]  ;;  %v234_v14 = vld [vmem:[#allocation2 + $0x30] sm:$0xff]  ;;  %v235_v15 = vld [vmem:[#allocation2 + $0x38] sm:$0xff]  ;;  %v630_v17 = vmov 0.0   ;;  %vm631_vm0 = vmmov 0  }
  0x37   : > { %457 = vmatpush3.bf16.msra.mxu0 %v456_v8  ;;  %v462_v13 = vpack.c.bf16 %v233_v12, %v232_v11  ;;  %v465_v16 = vpack.c.bf16 %v235_v15, %v234_v14  ;;  %v236_v18 = vld [vmem:[#allocation2 + $0x40] sm:$0xff]  ;;  %452 = vmatprep.mubr.msk.f32.mxu0 %vm631_vm0, %v630_v17  ;;  %v202_v20 = vand.u32 127, %v201_v19  ;;  %s632_s5 = smov 12   ;;  %vm222_vm2 = vcmask 31744   ;;  %s187_s6 = sand.u32 1, %s613_s13  }
  0x38   : > { %s416_s20 = sshll.u32 %s191_s19, 3  ;;  %458 = vmatprep.subr.bf16.mxu0 %v628_v7  ;;  %vm224_vm3 = vcmask 64512   ;;  %vm226_vm4 = vcmask 97280   ;;  %vm237_vm5 = vcmask 588800   ;;  %s415_s7 = sshll.u32 %s187_s6, 3 }
  0x39   : > { %s197_s26 = scalar_lea.vmem %s793_s1, %s416_s20  ;;  %s193_s29 = scalar_lea.vmem %s792_s0, %s416_s20 }
  0x3a   : > { %v203_v1 = vld [vmem:[%s197_s26] sm:$0xff]  ;;  %s189_s8 = scalar_lea.vmem [#allocation5], %s415_s7  ;;  %s421_s10 = sshll.u32 %s675_s16, 7 }
  0x3b   : > { %v198_v2 = vld [vmem:[%s193_s29] sm:$0xff]  ;;  %205 = vperm.xlu0 %526, %v203_v1   ;;  %460 = vmatpush3.bf16.msra.mxu0 %v459_v10  ;;  %s326_s9 = sshll.u32 %s189_s8, 4  ;;  %s752_s19 = scalar_lea.hbm %s795_s3, %s421_s10  ;;  %s747_s9 = int_to_ptr.vmem [resolvable:$true] %s326_s9 }
  0x3c   : > { %v200_v3 = vrot.slane %v198_v2, 1  ;;  %461 = vmatprep.subr.bf16.mxu0 %v628_v7  ;;  %v199_v23 = vrot.slane %v198_v2, 7  ;;  %s313_s20 = scalar_lea.sflag [#allocation4], %s187_s6  ;;  %s555_s25 = scalar_lea.vmem %s747_s9, 128 }
  0x3d   : > { %p556_p6 = scmp.ne.s32.totalorder %s747_s9, %s555_s25  ;;  %p806_p9 = scmp.ne.s32.totalorder %s799_s22, 0 }
  0x3e   : > { %215 = vrot.lane.b32.xlu1 %v200_v3, %s627_s30  ;;  %s633_s16 = smov [#allocation5]  }
  0x3f   : > { %211 = vrot.lane.b32.xlu0 %v198_v2, %s629_s4  ;;  %463 = vmatpush3.bf16.msra.mxu0 %v462_v13  ;;  %p557_p10 = pnand %p556_p6, %p806_p9  ;;  %s559_s27 = sshll.u32 %s633_s16, 4  ;;  %s560_s27 = int_to_ptr.vmem [resolvable:$false] %s559_s27 }
  0x40   : > { %464 = vmatprep.subr.bf16.mxu0 %v628_v7  ;;  %s561_s26 = scalar_lea.vmem %s560_s27, 256  ;;  %p562_p2 = scmp.lt.s32.totalorder %s747_s9, %s560_s27 }
  0x41   : > { %p558_p12 = pneg %p557_p10  ;;  %p563_p3 = scmp.lt.s32.totalorder %s561_s26, %s555_s25 }
  0x43   : > { %466 = vmatpush3.bf16.msra.mxu0 %v465_v16  ;;  %p564_p4 = por %p563_p3, %p562_p2 }
  0x44   : > { %450 = vmatprep.subr.mxu0 %v630_v17 }
  0x45   : > { %p565_p7 = pnand %p564_p4, %p558_p12 }
  0x47   : > { %451 = vmatpush3.msra.mxu0 %v236_v18 }
  0xb0   : > { %v216_v25 = vpop.permute.xlu1 %215 }
  0xba   : > { %v206_v21 = vpop.permute.xlu0 %205 }
  0xbb   : > { %vm207_vm1 = vcmp.eq.s32.totalorder %v202_v20, %v206_v21 }
  0xbc   : > { %v418_v22 = vsel %vm207_vm1, 1.0, %v630_v17 }
  0xbd   : > { %219 = vrot.lane.b32.xlu1 %v418_v22, %s632_s5 }
  0xbe   : > { %v212_v24 = vpop.permute.xlu0 %211 }
  0xbf   : > { %v223_v26 = vsel %vm222_vm2, %v199_v23, %v212_v24 }
  0xc0   : > { %v225_v27 = vsel %vm224_vm3, %v223_v26, %v216_v25 }
 0x12f   : > { %v220_v28 = vpop.permute.xlu1 %219 }
 0x130   : > { %v227_v29 = vsel %vm226_vm4, %v225_v27, %v220_v28 }
 0x131   : > { %453 = vmatmul.mubr.msk.f32.vlgmr.msra.gmra.mrb[0].mxu0 %vm237_vm5, %v227_v29 }
 0x204   : > { %v307_v30 = vpop.f32.mrb[0].mxu0 }
 0x205   : > { %311 = vst [vmem:[%s189_s8] sm:$0xff] %v307_v30  ;;  %v454_v31 = vpop.f32.mrb[1].mxu0 }
 0x206   : > { %568 = shalt.err (!%p565_p7)
}
 0x207   : > { %s569_s28 = scalar_lea.hbm %s752_s19, 128  ;;  %s573_s30 = scalar_lea.hbm %s795_s3, 256 }
 0x208   : > { %p570_p8 = scmp.ne.s32.totalorder %s752_s19, %s569_s28  ;;  %p574_p1 = scmp.lt.u32.totalorder %s752_s19, %s795_s3 }
 0x209   : > { %p575_p0 = scmp.lt.u32.totalorder %s573_s30, %s569_s28  ;;  %p577_p6 = scmp.lt.u32.totalorder %s569_s28, %s752_s19 }
 0x20a   : > { %p571_p11 = pnand %p570_p8, %p806_p9 }
 0x20b   : > { %p576_p5 = por %p575_p0, %p574_p1 }
 0x20c   : > { %p572_p13 = pneg %p571_p11 }
 0x20d   : > { %p578_p10 = por %p577_p6, %p576_p5 }
 0x20f   : > { %p579_p12 = pnand %p578_p10, %p572_p13 }
 0x211   : > { %582 = shalt.err (!%p579_p12)
}
 0x212   : > { %471 = dma.vmem_to_hbm [thread:$0]  (%p806_p9), %s747_s9, 128, %s752_s19, %s313_s20  }
 0x213 PF: > { %p483_p2 = scmp.ge.s32.totalorder %s621_s15, 2  ;;  %s338_s6 = sand.u32 1, %s609_s12  }
 0x214   : > { %p807_p3 = scmp.ne.s32.totalorder %s800_s23, 0  ;;  %s339_s7 = scalar_lea.sflag [#allocation4], %s338_s6 }
 0x216   : > { %p478_p4 = pnand %p483_p2, %p807_p3 }
 0x218   : > { %604 = dma.done.wait (!%p478_p4), %s339_s7, 128  }
 0x219   : > { %606 = vsyncadd (!%p478_p4), %s339_s7, 4294967168  ;;  %p14_p7 = scmp.ge.s32.totalorder %s679_s18, 4   ;;  %s808_s12 = smov %s613_s13 }
 0x21a   : > { %s809_s13 = smov %s617_s14  ;;  %s810_s14 = smov %s690_s21 }
 0x21b   : > { %s811_s15 = smov %s679_s18  ;;  %16 = sbr.rel (!%p14_p7) target bundleno = 4 (0x4), region = 75 }
 0x222   :  { %344 = vsyncpa [#allocation3], 1 }
 0x223   :  { %346 = vsyncpa [#allocation3 + $0x1], 1 }
 0x224   :  { %347 = vsyncpa [#allocation4], 1 }
 0x225   :  { %349 = vsyncpa [#allocation4 + $0x1], 1 }

</bundles_post_ra>
